<compile_context>
chip_gen: v7x
topology: tpu7x:2x2x1
jax: 0.10.0
libtpu: 0.0.40
codegen_flags: <defaults>
</compile_context>

<pallas_src>
import jax
import jax.numpy as jnp
from jax import lax
from jax.experimental import pallas as pl
from jax.experimental.pallas import tpu as pltpu


def _round_up(x, m):
    return -(-x // m) * m


_VMEM_BLOCK_BUDGET = 24 << 20  # double-buffered block budget; safe on v7x (64 MiB)


def token_embedding_kernel(x_ref, w_ref, o_ref):
    # x_ref: (TM, K*c_in) bf16   w_ref: (K*c_in, TN) bf16   o_ref: (TM, TN)
    o_ref[...] = jnp.dot(
        x_ref[...], w_ref[...], preferred_element_type=jnp.float32
    ).astype(o_ref.dtype)


def _choose_row_tile(m_rows):
    """Row (B*L) tile: as large as useful, but >=2 tiles when cheaply possible so
    both v7x TensorCores get work (row split keeps the weight tile per core fixed)."""
    for tm in (512, 256):
        if m_rows >= 2 * tm:
            return tm
    m_pad = _round_up(m_rows, 8)
    if m_pad >= 16 and m_pad % 16 == 0:
        return m_pad // 2
    return m_pad


def _choose_col_tile(c_out_pad, tm, kc, out_itemsize):
    """c_out tile: largest lane-aligned (multiple of 128) tile whose
    double-buffered blocks fit the VMEM budget; split only when over budget."""
    def blk_bytes(tn):
        return 2 * (tm * kc * 2 + kc * tn * 2 + tm * tn * out_itemsize)
    tn = c_out_pad
    while tn % 256 == 0 and blk_bytes(tn) > _VMEM_BLOCK_BUDGET:
        tn //= 2
    return tn


def token_embedding(x, weight_ptk, out_dtype=None):
    """x: (B, L, c_in); weight_ptk: (c_out, c_in, K) PyTorch-layout Conv1d weight.

    Returns (B, L, c_out) in `out_dtype` (defaults to x.dtype; pass jnp.bfloat16
    to halve the dominant HBM write stream if downstream allows)."""
    B, L, c_in = x.shape
    c_out, _, K = weight_ptk.shape
    pad = (K - 1) // 2
    out_dtype = x.dtype if out_dtype is None else out_dtype
    out_itemsize = jnp.dtype(out_dtype).itemsize

    # ---- wrapper-side precompute (runs once, not per grid step) --------------
    # Tap k of the circular conv reads x[(t + k - pad) mod L] == roll(x, pad-k)[t].
    # Bake all K taps into the lane axis so the kernel is a pure matmul.
    x_bf = x.astype(jnp.bfloat16)
    taps = [jnp.roll(x_bf, pad - k, axis=1) for k in range(K)]
    x_cat = jnp.concatenate(taps, axis=-1).reshape(B * L, K * c_in)  # (M, K*c_in)

    # (c_out, c_in, K) -> (K*c_in, c_out); row index k*c_in + ci matches the
    # concat order above.  bf16 for the MXU.
    w_flat = jnp.transpose(weight_ptk, (2, 1, 0)).reshape(K * c_in, c_out)
    w_flat = w_flat.astype(jnp.bfloat16)

    # Lane-dense output: pad c_out up to a multiple of 128, slice afterwards.
    c_out_pad = _round_up(c_out, 128)
    if c_out_pad != c_out:
        w_flat = jnp.pad(w_flat, ((0, 0), (0, c_out_pad - c_out)))

    M = B * L
    KC = K * c_in
    tm = _choose_row_tile(M)
    M_pad = _round_up(M, tm)
    if M_pad != M:
        x_cat = jnp.pad(x_cat, ((0, M_pad - M), (0, 0)))
    tn = _choose_col_tile(c_out_pad, tm, KC, out_itemsize)

    blk_bytes = 2 * (tm * KC * 2 + KC * tn * 2 + tm * tn * out_itemsize)
    vmem_limit = int(min(40 << 20, max(8 << 20, 2 * blk_bytes)))

    out_pad = pl.pallas_call(
        token_embedding_kernel,
        out_shape=jax.ShapeDtypeStruct((M_pad, c_out_pad), out_dtype),
        grid_spec=pl.GridSpec(
            grid=(M_pad // tm, c_out_pad // tn),
            in_specs=[
                pl.BlockSpec((tm, KC), lambda i, j: (i, 0)),
                pl.BlockSpec((KC, tn), lambda i, j: (0, j)),
            ],
            out_specs=pl.BlockSpec((tm, tn), lambda i, j: (i, j)),
        ),
        compiler_params=pltpu.CompilerParams(
            dimension_semantics=("parallel", "parallel"),
            vmem_limit_bytes=vmem_limit,
        ),
    )(x_cat, w_flat)

    return out_pad[:M, :c_out].reshape(B, L, c_out)


def reference_token_embedding(x, weight_ptk):
    """Plain-JAX reference reproducing nn.Conv1d(padding_mode='circular')."""
    B, L, c_in = x.shape
    c_out, _, K = weight_ptk.shape
    pad = (K - 1) // 2
    x_ncl = jnp.transpose(x, (0, 2, 1))                          # (B, c_in, L)
    x_pad = jnp.concatenate([x_ncl[..., -pad:], x_ncl, x_ncl[..., :pad]], axis=-1)
    y = lax.conv_general_dilated(
        x_pad, weight_ptk,
        window_strides=(1,), padding="VALID",
        dimension_numbers=("NCH", "OIH", "NCH"))                 # (B, c_out, L)
    return jnp.transpose(y, (0, 2, 1))                           # (B, L, c_out)


if __name__ == "__main__":
    B, L, c_in, c_out, K = 2, 32, 4, 256, 3

    key = jax.random.PRNGKey(0)
    kx, kw = jax.random.split(key)

    x = jax.random.normal(kx, (B, L, c_in), dtype=jnp.float32)

    # kaiming_normal_(mode='fan_in', nonlinearity='leaky_relu'):
    # gain = sqrt(2), fan_in = c_in * K  ->  std = sqrt(2 / (c_in * K)).
    std = (2.0 / (c_in * K)) ** 0.5
    weight = std * jax.random.normal(kw, (c_out, c_in, K), dtype=jnp.float32)

    out = jax.block_until_ready(token_embedding(x, weight))
    ref = reference_token_embedding(x, weight)

    assert out.shape == (B, L, c_out)
    # bf16 MXU inputs with f32 accumulation -> compare at bf16-level tolerance.
    assert jnp.allclose(out, ref, atol=5e-2, rtol=5e-2), "mismatch vs reference conv"

    print("KERNEL_OK")
</pallas_src>

<mosaic_0001>
module attributes {stable_mosaic.version = 11 : i64} {
  func.func @token_embedding_kernel(%arg0: i32, %arg1: i32, %arg2: memref<32x12xbf16, #tpu.memory_space<vmem>>, %arg3: memref<12x256xbf16, #tpu.memory_space<vmem>>, %arg4: memref<32x256xf32, #tpu.memory_space<vmem>>) attributes {dimension_semantics = [#tpu.dimension_semantics<parallel>, #tpu.dimension_semantics<parallel>], iteration_bounds = array<i64: 2, 1>, scalar_prefetch = 0 : i64, scratch_operands = 0 : i64, tpu.core_type = #tpu.core_type<tc>, window_params = [{transform_indices = @transform_0, window_bounds = array<i64: 32, 12>}, {transform_indices = @transform_1, window_bounds = array<i64: 12, 256>}, {transform_indices = @transform_2, window_bounds = array<i64: 32, 256>}]} {
    %c0 = arith.constant 0 : index
    %c0_0 = arith.constant 0 : index
    %0 = vector.load %arg2[%c0, %c0_0] : memref<32x12xbf16, #tpu.memory_space<vmem>>, vector<32x12xbf16>
    %c0_1 = arith.constant 0 : index
    %c0_2 = arith.constant 0 : index
    %1 = vector.load %arg3[%c0_1, %c0_2] : memref<12x256xbf16, #tpu.memory_space<vmem>>, vector<12x256xbf16>
    %cst = arith.constant dense<0.000000e+00> : vector<32x256xf32>
    %2 = tpu.matmul %0, %1, %cst {dimension_numbers = #tpu.dot_dimension_numbers<[1], [0], [0], [1], [0, 0, 1, 1], [], []>} : vector<32x12xbf16>, vector<12x256xbf16>, vector<32x256xf32> -> vector<32x256xf32>
    %c0_3 = arith.constant 0 : index
    %c0_4 = arith.constant 0 : index
    %3 = vector.load %arg4[%c0_3, %c0_4] : memref<32x256xf32, #tpu.memory_space<vmem>>, vector<32x256xf32>
    tpu.vector_store %arg4[%c0_3, %c0_4], %2 {strides = array<i32>} : memref<32x256xf32, #tpu.memory_space<vmem>>, vector<32x256xf32>,
    return
  }
  func.func @transform_0(%arg0: i32, %arg1: i32) -> (i32, i32) {
    %c0_i32 = arith.constant 0 : i32
    %c0_i32_0 = arith.constant 0 : i32
    return %arg0, %c0_i32 : i32, i32
  }
  func.func @transform_1(%arg0: i32, %arg1: i32) -> (i32, i32) {
    %c0_i32 = arith.constant 0 : i32
    %c0_i32_0 = arith.constant 0 : i32
    return %c0_i32, %arg1 : i32, i32
  }
  func.func @transform_2(%arg0: i32, %arg1: i32) -> (i32, i32) {
    %c0_i32 = arith.constant 0 : i32
    return %arg0, %arg1 : i32, i32
  }
}

</mosaic_0001>

<bundles_post_ra>
// kernel: tpu_custom_call.1
= control target key start
LH: loop header
LB: loop body
LE: loop exit
PB: predicated region body
PF: predicated region fallthrough
CT: control target
= control target key end

     0   :  { %7 = vsyncpa [#allocation3], 0  ;;  %s695_s0 = inlined_call_operand.vmem [shape: bf16[64,12], index: 0, kind: input, shape index: {}]   ;;  %s696_s1 = inlined_call_operand.vmem [shape: bf16[12,256], index: 1, kind: input, shape index: {}]   ;;  %s697_s2 = inlined_call_operand.hbm [shape: f32[64,256], index: 2, kind: output, shape index: {}]  }
   0x1   :  { %9 = vsyncpa [#allocation3 + $0x1], 0  ;;  %s575_s9 = smov 0   ;;  %s577_s10 = smov 0  }
   0x2   :  { %s579_s11 = smov 0   ;;  %s581_s12 = smov 0  }
   0x3   :  { %s583_s13 = smov 0   ;;  %s585_s14 = smov 0  }
   0x4 LB: > { %s387_s15 = sadd.s32 4294967295, %s554_s14   ;;  %s388_s16 = sadd.s32 4294967294, %s554_s14   ;;  %s554_s14 = sphi %s585_s14, %s15_s14   ;;  %s550_s13 = sphi %s583_s13, %s704_s13   ;;  %s546_s12 = sphi %s581_s12, %s703_s12   ;;  %s542_s11 = sphi %s579_s11, %s702_s11   ;;  %s538_s10 = sphi %s577_s10, %s701_s10   ;;  %s534_s9 = sphi %s575_s9, %s700_s9  }
   0x5   : > { %s27_s17 = sadd.s32 1, %s550_s13  ;;  %s88_s18 = sadd.s32 1, %s542_s11 }
   0x6   : > { %p29_p0 = scmp.ge.s32.totalorder %s27_s17, 2  ;;  %p98_p1 = scmp.ne.s32.totalorder %s542_s11, %s538_s10 }
   0x7   : > { %p99_p2 = scmp.eq.s32.totalorder %s387_s15, 1  ;;  %p104_p3 = scmp.ne.s32.totalorder %s538_s10, %s534_s9 }
   0x8   : > { %s706_s17 = smov (%p29_p0, %s27_s17), 0  ;;  %p105_p5 = scmp.eq.s32.totalorder %s388_s16, 1 }
   0x9   : > { %p615_p4 = por %p99_p2, %p98_p1  ;;  %s83_s20 = ssub.s32 %s550_s13, %s706_s17 }
   0xa   : > { %p392_p6 = scmp.ge.s32.totalorder %s554_s14, 1  ;;  %p86_p7 = scmp.eq.s32.totalorder %s83_s20, 0 }
   0xb   : > { %p622_p8 = por %p105_p5, %p104_p3  ;;  %p141_p9 = scmp.lt.s32.totalorder %s554_s14, 3 }
   0xc   : > { %s628_s22 = scalar_select %p86_p7, %s542_s11, %s88_s18  }
   0xd   : > { %p142_p10 = pnand %p392_p6, %p141_p9 }
   0xe   : > { %v471_v0 = vld [vmem:[%s696_s1 + $0x4] ss:$8 sps:$4 sm:$0x3f] (!%p142_p10)   ;;  %vm214_vm0 = vcmask (!%p142_p10), 1045504   ;;  %s394_s27 = sshll.u32 (!%p142_p10), %s546_s12, 2  ;;  %v556_v3 = vmov (!%p142_p10), 0  }
   0xf   : > { %145 = sbr.rel (%p142_p10) target bundleno = 256 (0x100), region = 28  ;;  %v473_v1 = vld [vmem:[%s696_s1] ss:$8 sps:$4 sm:$0x3f] (!%p142_p10)   ;;  %400 = vmatprep.subr.msk.bf16.mxu0 (!%p142_p10), %vm214_vm0, %v471_v0  ;;  %411 = vmatprep.subr.msk.bf16.mxu1 (!%p142_p10), %vm214_vm0, %v471_v0  ;;  %p169_p11 = scmp.lt.s32.totalorder (!%p142_p10), %s394_s27, 7  ;;  %vm207_vm1 = vcmask (!%p142_p10), 97280  }
  0x10   : > { %v216_v2 = vsel (!%p142_p10), %vm214_vm0, %v473_v1, 0  ;;  %253 = vmatprep.mubr.bf16.mxu0 (!%p142_p10), %v556_v3  ;;  %263 = vmatprep.mubr.bf16.mxu1 (!%p142_p10), %v556_v3  ;;  %s165_s4 = sand.u32 (!%p142_p10), 1, %s538_s10   ;;  %s410_s8 = sshll.u32 (!%p142_p10), %s546_s12, 10 }
  0x11   : > { %222 = vmatpush1.bf16.msra.mxu0 (!%p142_p10), %v216_v2  ;;  %412 = vmatpush1.bf16.msra.mxu1 (!%p142_p10), %v216_v2  ;;  %s393_s5 = sshll.u32 (!%p142_p10), %s165_s4, 6  ;;  %s647_s18 = scalar_lea.hbm (!%p142_p10), %s697_s2, %s410_s8 }
  0x12   : > { %s167_s6 = scalar_lea.vmem (!%p142_p10), [#allocation2], %s393_s5  ;;  %s649_s12 = scalar_lea.sflag (!%p142_p10), [#allocation3], %s165_s4 }
  0x13   : > { %s299_s7 = sshll.u32 (!%p142_p10), %s167_s6, 4  ;;  %s557_s23 = smov (!%p142_p10), [#allocation2]   ;;  %s642_s7 = int_to_ptr.vmem [resolvable:$true] %s299_s7 }
  0x14   : > { %s476_s20 = scalar_lea.vmem (!%p142_p10), %s642_s7, 1024  ;;  %s480_s24 = sshll.u32 (!%p142_p10), %s557_s23, 4  ;;  %s481_s24 = int_to_ptr.vmem [resolvable:$false] %s480_s24 }
  0x15   : > { %p477_p12 = scmp.ne.s32.totalorder (!%p142_p10), %s642_s7, %s476_s20  ;;  %s482_s25 = scalar_lea.vmem (!%p142_p10), %s481_s24, 2048 }
  0x16   : > { %s708_s27 = smov (!%p169_p11, %s394_s27), 7  ;;  %p483_p1 = scmp.lt.s32.totalorder %s642_s7, %s481_s24 }
  0x17   : > { %s395_s28 = sshll.u32 %s708_s27, 2  ;;  %p478_p13 = pnand %p477_p12, %p615_p4 }
  0x18   : > { %s172_s3 = scalar_lea.vmem %s695_s0, %s395_s28  ;;  %p484_p2 = scmp.lt.s32.totalorder %s482_s25, %s476_s20 }
  0x19   : > { %v474_v4 = vld [vmem:[%s172_s3] sm:$0xff]   ;;  %v475_v5 = vld [vmem:[%s172_s3 + $0x8] sm:$0xff]   ;;  %p479_p0 = pneg %p478_p13 }
  0x1a   : > { %401 = vmatmul.mubr.msk.bf16.vlgmr.msra.gmra.mrb[0].mxu0 %vm207_vm1, %v474_v4  ;;  %402 = vmatmul.mubr.msk.bf16.vlgmr.msra.gmra.mrb[0].mxu1 %vm207_vm1, %v475_v5  ;;  %p485_p3 = por %p484_p2, %p483_p1 }
  0x1c   : > { %p486_p5 = pnand %p485_p3, %p479_p0 }
  0xed   : > { %v255_v6 = vpop.f32.mrb[0].mxu0  ;;  %v265_v7 = vpop.f32.mrb[0].mxu1 }
  0xee   : > { %274 = vst [vmem:[%s167_s6] sm:$0xff] %v255_v6  ;;  %v257_v8 = vpop.f32.mrb[1].mxu0  ;;  %278 = vst [vmem:[%s167_s6 + $0x20] sm:$0xff] %v265_v7  ;;  %v267_v9 = vpop.f32.mrb[1].mxu1 }
  0xef   : > { %275 = vst [vmem:[%s167_s6 + $0x8] sm:$0xff] %v257_v8  ;;  %v259_v10 = vpop.f32.mrb[2].mxu0  ;;  %279 = vst [vmem:[%s167_s6 + $0x28] sm:$0xff] %v267_v9  ;;  %v269_v11 = vpop.f32.mrb[2].mxu1 }
  0xf0   : > { %276 = vst [vmem:[%s167_s6 + $0x10] sm:$0xff] %v259_v10  ;;  %v261_v12 = vpop.f32.mrb[3].mxu0  ;;  %280 = vst [vmem:[%s167_s6 + $0x30] sm:$0xff] %v269_v11  ;;  %v271_v13 = vpop.f32.mrb[3].mxu1 }
  0xf1   : > { %277 = vst [vmem:[%s167_s6 + $0x18] sm:$0xff] %v261_v12  ;;  %281 = vst [vmem:[%s167_s6 + $0x38] sm:$0xff] %v271_v13 }
  0xf2   : > { %489 = shalt.err (!%p486_p5)
}
  0xf3   : > { %s490_s26 = scalar_lea.hbm %s647_s18, 1024  ;;  %s494_s29 = scalar_lea.hbm %s697_s2, 2048 }
  0xf4   : > { %p491_p6 = scmp.ne.s32.totalorder %s647_s18, %s490_s26  ;;  %p495_p10 = scmp.lt.u32.totalorder %s647_s18, %s697_s2 }
  0xf5   : > { %p496_p11 = scmp.lt.u32.totalorder %s494_s29, %s490_s26  ;;  %p498_p13 = scmp.lt.u32.totalorder %s490_s26, %s647_s18 }
  0xf6   : > { %p492_p7 = pnand %p491_p6, %p615_p4 }
  0xf7   : > { %p497_p12 = por %p496_p11, %p495_p10 }
  0xf8   : > { %p493_p9 = pneg %p492_p7 }
  0xf9   : > { %p499_p0 = por %p498_p13, %p497_p12 }
  0xfb   : > { %p500_p1 = pnand %p499_p0, %p493_p9 }
  0xfd   : > { %503 = shalt.err (!%p500_p1)
}
  0xfe   : > { %s558_s4 = smov 256   ;;  %s559_s5 = smov 16  }
  0xff   : > { %413 = dma.vmem_to_hbm [thread:$0]  (%p615_p4), %s642_s7, 1024, %s647_s18, %s649_s12, %s558_s4, %s558_s4, %s559_s5  }
 0x100 PF: > { %p419_p2 = scmp.ge.s32.totalorder %s554_s14, 2  ;;  %s314_s6 = sand.u32 1, %s534_s9  }
 0x101   : > { %s315_s8 = scalar_lea.sflag [#allocation3], %s314_s6 }
 0x102   : > { %p416_p3 = pnand %p419_p2, %p622_p8 }
 0x104   : > { %529 = dma.done.wait (!%p416_p3), %s315_s8, 1024  }
 0x105   : > { %531 = vsyncadd (!%p416_p3), %s315_s8, 4294966272  ;;  %s15_s14 = sadd.s32 1, %s554_s14   ;;  %s700_s9 = smov %s538_s10 }
 0x106   : > { %p12_p5 = scmp.ge.s32.totalorder %s15_s14, 4   ;;  %s701_s10 = smov %s542_s11 }
 0x107   : > { %s702_s11 = smov %s628_s22  ;;  %s703_s12 = smov %s550_s13 }
 0x108   : > { %s704_s13 = smov %s706_s17  ;;  %14 = sbr.rel (!%p12_p5) target bundleno = 4 (0x4), region = 66 }
 0x10f   :  { %320 = vsyncpa [#allocation3], 1 }
 0x110   :  { %322 = vsyncpa [#allocation3 + $0x1], 1 }

</bundles_post_ra>
